<compile_context>
chip_gen: v7x
topology: tpu7x:2x2x1
jax: 0.10.0
libtpu: 0.0.40
codegen_flags: <defaults>
</compile_context>

<pallas_src>
import jax
import jax.numpy as jnp
from jax import lax
from jax.experimental import pallas as pl
from jax.experimental.pallas import tpu as pltpu


def _round_up(n, m):
    return ((n + m - 1) // m) * m


def _cdiv(a, b):
    return -(-a // b)


def _make_mlp_kernel(features_major):
    def mlp_kernel(x_ref, w1_ref, b1_ref, w2_ref, b2_ref, w3_ref, b3_ref, o_ref):
        # x_ref: [TB, F] (batch-major) or [F, TB] (features-major)
        # w1_ref: [N1, F], b1_ref: [N1, 1]
        # w2_ref: [N2, N1], b2_ref: [N2, 1]
        # w3_ref: [N2, 1], b3_ref: [1] scalar in SMEM
        # o_ref:  [1, TB]  (lane-dense output row)

        # fc1 + ReLU -> [N1, TB] (batch on lanes)
        if features_major:
            h1 = jnp.dot(w1_ref[...], x_ref[...],
                         preferred_element_type=jnp.float32)
        else:
            h1 = lax.dot_general(
                w1_ref[...], x_ref[...],
                dimension_numbers=(((1,), (1,)), ((), ())),
                preferred_element_type=jnp.float32)
        h1 = jnp.maximum(h1 + b1_ref[...], 0.0)

        # fc2 + ReLU -> [N2, TB]
        h1 = h1.astype(w2_ref.dtype)   # keeps bf16 MXU path when weights are bf16
        h2 = jnp.dot(w2_ref[...], h1, preferred_element_type=jnp.float32)
        h2 = jnp.maximum(h2 + b2_ref[...], 0.0)

        # out layer (N=1): VPU multiply + cross-sublane reduction.
        y = jnp.sum(h2 * w3_ref[...], axis=0, keepdims=True) + b3_ref[0]  # [1, TB]
        o_ref[...] = y.astype(o_ref.dtype)

    return mlp_kernel


def regression_model_forward(x, params, *, x_transposed=False, block_b=32768,
                             target_steps=8,
                             vmem_budget_bytes=48 * 1024 * 1024):
    """Fused 3-layer MLP forward.

    x: [B, input_size] (default) or [input_size, B] if x_transposed=True.
    Returns [B, 1] float32.
    """
    w1, b1, w2, b2, w3, b3 = params
    if x_transposed:
        F, B = x.shape
    else:
        B, F = x.shape
    N1 = w1.shape[0]
    N2 = w2.shape[0]

    # bf16 operand path only when x *already* arrives narrow; casting the tiny
    # weights to match is cheap, casting x in the wrapper would not be.
    if x.dtype == jnp.bfloat16:
        w1 = w1.astype(jnp.bfloat16)
        w2 = w2.astype(jnp.bfloat16)

    # ---- batch-tile sizing against the *padded* VMEM cost of the x block ----
    # batch-major [TB, F]: minor dim F pads to 128 lanes (8x inflation for F=16)
    # features-major [F, TB]: F on sublanes (rounded to 8), TB lane-dense.
    x_row_bytes = (_round_up(F, 8) if x_transposed else _round_up(F, 128)) \
        * x.dtype.itemsize
    out_row_bytes = 8 * 4                      # (1, TB) f32 block: sublane 1 -> 8
    slack = 2 * 1024 * 1024                    # weights + compiler scratch margin
    tb_vmem_cap = (vmem_budget_bytes - slack) // (2 * (x_row_bytes + out_row_bytes))
    tb_vmem_cap = max(128, (tb_vmem_cap // 128) * 128)

    tb_target = _round_up(max(1, _cdiv(B, target_steps)), 128)
    TB = max(128, min(block_b, tb_target, tb_vmem_cap))

    B_pad = _round_up(B, TB)
    if B_pad != B:
        pad = ((0, 0), (0, B_pad - B)) if x_transposed else ((0, B_pad - B), (0, 0))
        x = jnp.pad(x, pad)
    grid = (B_pad // TB,)

    vmem_needed = 2 * TB * (x_row_bytes + out_row_bytes) + slack
    vmem_limit = int(min(max(vmem_needed, 32 * 1024 * 1024), 100 * 1024 * 1024))

    flops = 2 * B_pad * (F * N1 + N1 * N2 + N2)
    bytes_accessed = (
        B_pad * F * x.dtype.itemsize            # x read (dominant term)
        + B_pad * 4                             # output write (f32)
        + w1.size * w1.dtype.itemsize
        + w2.size * w2.dtype.itemsize
        + (b1.size + b2.size + w3.size + b3.size) * 4
    )

    if x_transposed:
        x_spec = pl.BlockSpec((F, TB), lambda i: (0, i))
    else:
        x_spec = pl.BlockSpec((TB, F), lambda i: (i, 0))

    out = pl.pallas_call(
        _make_mlp_kernel(x_transposed),
        out_shape=jax.ShapeDtypeStruct((1, B_pad), jnp.float32),
        grid=grid,
        in_specs=[
            x_spec,                                      # streamed x tile
            pl.BlockSpec((N1, F), lambda i: (0, 0)),     # w1 (VMEM-resident)
            pl.BlockSpec((N1, 1), lambda i: (0, 0)),     # b1
            pl.BlockSpec((N2, N1), lambda i: (0, 0)),    # w2
            pl.BlockSpec((N2, 1), lambda i: (0, 0)),     # b2
            pl.BlockSpec((N2, 1), lambda i: (0, 0)),     # w3 column
            pl.BlockSpec(memory_space=pltpu.MemorySpace.SMEM),  # b3 scalar
        ],
        out_specs=pl.BlockSpec((1, TB), lambda i: (0, i)),
        compiler_params=pltpu.CompilerParams(
            dimension_semantics=("parallel",),
            vmem_limit_bytes=vmem_limit,
        ),
        cost_estimate=pl.CostEstimate(
            flops=flops, transcendentals=0, bytes_accessed=bytes_accessed),
    )(x, w1, b1, w2, b2, w3, b3)

    return out[0, :B].reshape(B, 1).astype(jnp.float32)


def init_params(key, input_size, nodes):
    """Xavier-normal weights, zero biases (matches the PyTorch init scheme).

    Weights stay in PyTorch-native [out_features, in_features] layout; biases
    are stored as columns [out_features, 1] for the transposed (batch-on-lanes)
    compute; the final layer weight is stored as an [N2, 1] column.
    """
    def xavier_normal(k, fan_out, fan_in):
        std = (2.0 / (fan_in + fan_out)) ** 0.5
        return std * jax.random.normal(k, (fan_out, fan_in), dtype=jnp.float32)

    k1, k2, k3 = jax.random.split(key, 3)
    w1 = xavier_normal(k1, nodes, input_size)          # [N1, F]
    b1 = jnp.zeros((nodes, 1), jnp.float32)
    w2 = xavier_normal(k2, nodes // 2, nodes)          # [N2, N1]
    b2 = jnp.zeros((nodes // 2, 1), jnp.float32)
    w3 = xavier_normal(k3, 1, nodes // 2).T            # stored as [N2, 1]
    b3 = jnp.zeros((1,), jnp.float32)
    return (w1, b1, w2, b2, w3, b3)


def reference_forward(x, params):
    w1, b1, w2, b2, w3, b3 = params
    h1 = jnp.maximum(x @ w1.T + b1[:, 0], 0.0)
    h2 = jnp.maximum(h1 @ w2.T + b2[:, 0], 0.0)
    return h2 @ w3 + b3


if __name__ == "__main__":
    input_size = 16
    nodes = 32
    batch = 8

    key = jax.random.PRNGKey(0)
    k_x, k_p, k_big = jax.random.split(key, 3)
    x = jax.random.normal(k_x, (batch, input_size), dtype=jnp.float32)
    params = init_params(k_p, input_size, nodes)
    ref = reference_forward(x, params)

    # f32, batch-major path
    out = jax.block_until_ready(regression_model_forward(x, params))
    assert out.shape == (batch, 1), out.shape
    assert jnp.allclose(out, ref, atol=1e-5, rtol=1e-5), "f32 mismatch vs reference"

    # features-major path (lane-dense x DMA) -- x supplied already transposed.
    out_t = jax.block_until_ready(
        regression_model_forward(jnp.asarray(x.T), params, x_transposed=True))
    assert jnp.allclose(out_t, ref, atol=1e-5, rtol=1e-5), "features-major mismatch"

    # bf16-input path (x already bf16 -> weights cast to bf16, f32 accumulation).
    out_bf16 = jax.block_until_ready(
        regression_model_forward(x.astype(jnp.bfloat16), params))
    assert jnp.allclose(out_bf16, ref, atol=5e-2, rtol=5e-2), "bf16 mismatch"

    # larger non-multiple batch: exercises multi-step grid + tail padding/slice.
    x_big = jax.random.normal(k_big, (1000, input_size), dtype=jnp.float32)
    ref_big = reference_forward(x_big, params)
    out_big = jax.block_until_ready(regression_model_forward(x_big, params))
    assert out_big.shape == (1000, 1), out_big.shape
    assert jnp.allclose(out_big, ref_big, atol=1e-4, rtol=1e-4), "tiled mismatch"

    print("KERNEL_OK")
</pallas_src>

<mosaic_0001>
module attributes {stable_mosaic.version = 11 : i64} {
  func.func @mlp_kernel(%arg0: i32, %arg1: memref<128x16xf32, #tpu.memory_space<vmem>>, %arg2: memref<32x16xf32, #tpu.memory_space<vmem>>, %arg3: memref<32x1xf32, #tpu.memory_space<vmem>>, %arg4: memref<16x32xf32, #tpu.memory_space<vmem>>, %arg5: memref<16x1xf32, #tpu.memory_space<vmem>>, %arg6: memref<16x1xf32, #tpu.memory_space<vmem>>, %arg7: memref<1xf32, #tpu.memory_space<smem>>, %arg8: memref<1x128xf32, #tpu.memory_space<vmem>>) attributes {dimension_semantics = [#tpu.dimension_semantics<parallel>], iteration_bounds = array<i64: 1>, scalar_prefetch = 0 : i64, scratch_operands = 0 : i64, tpu.core_type = #tpu.core_type<tc>, window_params = [{transform_indices = @transform_0, window_bounds = array<i64: 128, 16>}, {pipeline_mode = #tpu.pipeline_mode<synchronous>, transform_indices = @transform_1, window_bounds = array<i64: 32, 16>}, {pipeline_mode = #tpu.pipeline_mode<synchronous>, transform_indices = @transform_2, window_bounds = array<i64: 32, 1>}, {pipeline_mode = #tpu.pipeline_mode<synchronous>, transform_indices = @transform_3, window_bounds = array<i64: 16, 32>}, {pipeline_mode = #tpu.pipeline_mode<synchronous>, transform_indices = @transform_4, window_bounds = array<i64: 16, 1>}, {pipeline_mode = #tpu.pipeline_mode<synchronous>, transform_indices = @transform_5, window_bounds = array<i64: 16, 1>}, {transform_indices = @transform_6, window_bounds = array<i64: 1>}, {transform_indices = @transform_7, window_bounds = array<i64: 1, 128>}]} {
    %c0 = arith.constant 0 : index
    %c0_0 = arith.constant 0 : index
    %0 = vector.load %arg2[%c0, %c0_0] : memref<32x16xf32, #tpu.memory_space<vmem>>, vector<32x16xf32>
    %c0_1 = arith.constant 0 : index
    %c0_2 = arith.constant 0 : index
    %1 = vector.load %arg1[%c0_1, %c0_2] : memref<128x16xf32, #tpu.memory_space<vmem>>, vector<128x16xf32>
    %cst = arith.constant dense<0.000000e+00> : vector<32x128xf32>
    %2 = tpu.matmul %0, %1, %cst {dimension_numbers = #tpu.dot_dimension_numbers<[1], [1], [0], [0], [0, 0, 1, 0], [], []>} : vector<32x16xf32>, vector<128x16xf32>, vector<32x128xf32> -> vector<32x128xf32>
    %c0_3 = arith.constant 0 : index
    %c0_4 = arith.constant 0 : index
    %3 = vector.load %arg3[%c0_3, %c0_4] : memref<32x1xf32, #tpu.memory_space<vmem>>, vector<32x1xf32>
    %4 = vector.broadcast %3 : vector<32x1xf32> to vector<32x128xf32>
    %5 = arith.addf %2, %4 : vector<32x128xf32>
    %cst_5 = arith.constant 0.000000e+00 : f32
    %6 = vector.broadcast %cst_5 : f32 to vector<32x128xf32>
    %7 = arith.maximumf %5, %6 : vector<32x128xf32>
    %c0_6 = arith.constant 0 : index
    %c0_7 = arith.constant 0 : index
    %8 = vector.load %arg4[%c0_6, %c0_7] : memref<16x32xf32, #tpu.memory_space<vmem>>, vector<16x32xf32>
    %cst_8 = arith.constant dense<0.000000e+00> : vector<16x128xf32>
    %9 = tpu.matmul %8, %7, %cst_8 {dimension_numbers = #tpu.dot_dimension_numbers<[1], [0], [0], [1], [0, 0, 1, 1], [], []>} : vector<16x32xf32>, vector<32x128xf32>, vector<16x128xf32> -> vector<16x128xf32>
    %c0_9 = arith.constant 0 : index
    %c0_10 = arith.constant 0 : index
    %10 = vector.load %arg5[%c0_9, %c0_10] : memref<16x1xf32, #tpu.memory_space<vmem>>, vector<16x1xf32>
    %11 = vector.broadcast %10 : vector<16x1xf32> to vector<16x128xf32>
    %12 = arith.addf %9, %11 : vector<16x128xf32>
    %cst_11 = arith.constant 0.000000e+00 : f32
    %13 = vector.broadcast %cst_11 : f32 to vector<16x128xf32>
    %14 = arith.maximumf %12, %13 : vector<16x128xf32>
    %c0_12 = arith.constant 0 : index
    %c0_13 = arith.constant 0 : index
    %15 = vector.load %arg6[%c0_12, %c0_13] : memref<16x1xf32, #tpu.memory_space<vmem>>, vector<16x1xf32>
    %16 = vector.broadcast %15 : vector<16x1xf32> to vector<16x128xf32>
    %17 = arith.mulf %14, %16 : vector<16x128xf32>
    %cst_14 = arith.constant dense<0.000000e+00> : vector<128xf32>
    %18 = vector.multi_reduction <add>, %17, %cst_14 [0] : vector<16x128xf32> to vector<128xf32>
    %19 = vector.shape_cast %18 : vector<128xf32> to vector<1x128xf32>
    %c0_15 = arith.constant 0 : index
    %20 = memref.load %arg7[%c0_15] : memref<1xf32, #tpu.memory_space<smem>>
    %21 = vector.broadcast %20 : f32 to vector<1x128xf32>
    %22 = arith.addf %19, %21 : vector<1x128xf32>
    %c0_16 = arith.constant 0 : index
    %c0_17 = arith.constant 0 : index
    %23 = vector.load %arg8[%c0_16, %c0_17] : memref<1x128xf32, #tpu.memory_space<vmem>>, vector<1x128xf32>
    tpu.vector_store %arg8[%c0_16, %c0_17], %22 {strides = array<i32>} : memref<1x128xf32, #tpu.memory_space<vmem>>, vector<1x128xf32>,
    return
  }
  func.func @transform_0(%arg0: i32) -> (i32, i32) {
    %c0_i32 = arith.constant 0 : i32
    %c0_i32_0 = arith.constant 0 : i32
    return %arg0, %c0_i32 : i32, i32
  }
  func.func @transform_1(%arg0: i32) -> (i32, i32) {
    %c0_i32 = arith.constant 0 : i32
    %c0_i32_0 = arith.constant 0 : i32
    %c0_i32_1 = arith.constant 0 : i32
    return %c0_i32, %c0_i32_0 : i32, i32
  }
  func.func @transform_2(%arg0: i32) -> (i32, i32) {
    %c0_i32 = arith.constant 0 : i32
    %c0_i32_0 = arith.constant 0 : i32
    %c0_i32_1 = arith.constant 0 : i32
    return %c0_i32, %c0_i32_0 : i32, i32
  }
  func.func @transform_3(%arg0: i32) -> (i32, i32) {
    %c0_i32 = arith.constant 0 : i32
    %c0_i32_0 = arith.constant 0 : i32
    %c0_i32_1 = arith.constant 0 : i32
    return %c0_i32, %c0_i32_0 : i32, i32
  }
  func.func @transform_4(%arg0: i32) -> (i32, i32) {
    %c0_i32 = arith.constant 0 : i32
    %c0_i32_0 = arith.constant 0 : i32
    %c0_i32_1 = arith.constant 0 : i32
    return %c0_i32, %c0_i32_0 : i32, i32
  }
  func.func @transform_5(%arg0: i32) -> (i32, i32) {
    %c0_i32 = arith.constant 0 : i32
    %c0_i32_0 = arith.constant 0 : i32
    %c0_i32_1 = arith.constant 0 : i32
    return %c0_i32, %c0_i32_0 : i32, i32
  }
  func.func @transform_6(%arg0: i32) -> i32 {
    %c0_i32 = arith.constant 0 : i32
    %c0_i32_0 = arith.constant 0 : i32
    return %c0_i32 : i32
  }
  func.func @transform_7(%arg0: i32) -> (i32, i32) {
    %c0_i32 = arith.constant 0 : i32
    %c0_i32_0 = arith.constant 0 : i32
    return %c0_i32, %arg0 : i32, i32
  }
}

</mosaic_0001>

<bundles_post_ra>
// kernel: tpu_custom_call.1
= control target key start
LH: loop header
LB: loop body
LE: loop exit
PB: predicated region body
PF: predicated region fallthrough
CT: control target
= control target key end

     0   :  { %vm72_vm0 = vcmask 130048   ;;  %v540_v6 = vmov 0   ;;  %s731_s0 = inlined_call_operand.vmem [shape: f32[128,16], index: 0, kind: input, shape index: {}]   ;;  %s732_s1 = inlined_call_operand.vmem [shape: f32[32,16], index: 1, kind: input, shape index: {}]   ;;  %s733_s2 = inlined_call_operand.vmem [shape: f32[32,1], index: 2, kind: input, shape index: {}]   ;;  %s734_s3 = inlined_call_operand.vmem [shape: f32[16,32], index: 3, kind: input, shape index: {}]   ;;  %s735_s4 = inlined_call_operand.vmem [shape: f32[16,1], index: 4, kind: input, shape index: {}]   ;;  %s736_s5 = inlined_call_operand.vmem [shape: f32[16,1], index: 5, kind: input, shape index: {}]   ;;  %s737_s6 = inlined_call_operand.<no memory space> [shape: f32[1], index: 6, kind: input, shape index: {}]   ;;  %s738_s7 = inlined_call_operand.hbm [shape: f32[1,128], index: 7, kind: output, shape index: {}]  }
   0x1   :  { %v32_v0 = vld [vmem:[%s731_s0] sm:$0xff]  ;;  %v33_v1 = vld [vmem:[%s731_s0 + $0x8] sm:$0xff]  ;;  %v34_v2 = vld [vmem:[%s731_s0 + $0x10] sm:$0xff]  ;;  %514 = vset.pattern.permute.xlu0 %v540_v6  ;;  %515 = vset.pattern.permute.xlu1 %v540_v6 }
   0x2   :  { %v456_v3 = vpack.c.bf16 %v33_v1, %v32_v0  ;;  %vm593_vm1 = vmpackc.low %vm72_vm0, %vm72_vm0  ;;  %v35_v5 = vld [vmem:[%s731_s0 + $0x18] sm:$0xff]  ;;  %v28_v8 = vld [vmem:[%s732_s1] sm:$0xff] }
   0x3   :  { %v462_v7 = vpack.c.bf16 %v35_v5, %v34_v2  ;;  %v36_v9 = vld [vmem:[%s731_s0 + $0x20] sm:$0xff]  ;;  %v37_v10 = vld [vmem:[%s731_s0 + $0x28] sm:$0xff]  ;;  %439 = vmatprep.mubr.msk.f32.mxu0 %vm72_vm0, %v28_v8  ;;  %v50_v12 = vld [vmem:[%s733_s2 + $0x10] sm:$0xff] }
   0x4   :  { %458 = vmatprep.subr.msk.bf16.mxu0 %vm593_vm1, %v456_v3  ;;  %v48_v11 = vld [vmem:[%s733_s2] sm:$0xff]  ;;  %64 = vperm.xlu1 %515, %v50_v12   ;;  %v468_v13 = vpack.c.bf16 %v37_v10, %v36_v9  ;;  %v49_v14 = vld [vmem:[%s733_s2 + $0x8] sm:$0xff] }
   0x5   :  { %461 = vmatpush3.bf16.xpose.msk.msra.mxu0 %vm593_vm1, %v456_v3  ;;  %54 = vperm.xlu0 %514, %v48_v11  }
   0x6   :  { %464 = vmatprep.subr.msk.bf16.mxu0 %vm593_vm1, %v462_v7 }
   0x7   :  { %13 = vsyncpa [#allocation4], 0  ;;  %v51_v15 = vld [vmem:[%s733_s2 + $0x18] sm:$0xff]  ;;  %v224_v16 = vld [vmem:[%s735_s4] sm:$0xff]  ;;  %vm236_vm2 = vcmask 261120   ;;  %v342_v12 = vstv %s737_s6  ;;  %s541_s10 = smov [#allocation3]  }
   0x8   :  { %69 = vperm.xlu1 %515, %v51_v15   ;;  %v38_v17 = vld [vmem:[%s731_s0 + $0x30] sm:$0xff]  ;;  %v39_v18 = vld [vmem:[%s731_s0 + $0x38] sm:$0xff]  ;;  %v225_v19 = vld [vmem:[%s735_s4 + $0x8] sm:$0xff]  ;;  %s351_s4 = sshll.u32 %s541_s10, 4  ;;  %s352_s4 = int_to_ptr.vmem [resolvable:$true] %s351_s4 }
   0x9   :  { %59 = vperm.xlu0 %514, %v49_v14   ;;  %v474_v20 = vpack.c.bf16 %v39_v18, %v38_v17  ;;  %v320_v21 = vld [vmem:[%s736_s5] sm:$0xff]  ;;  %v321_v22 = vld [vmem:[%s736_s5 + $0x8] sm:$0xff]  ;;  %v42_v26 = vld [vmem:[%s731_s0 + $0x50] sm:$0xff]  ;;  %s516_s11 = scalar_lea.vmem %s352_s4, 16  ;;  %s520_s12 = scalar_lea.vmem %s352_s4, 32 }
   0xa   :  { %v40_v23 = vld [vmem:[%s731_s0 + $0x40] sm:$0xff]  ;;  %v41_v24 = vld [vmem:[%s731_s0 + $0x48] sm:$0xff]  ;;  %v43_v27 = vld [vmem:[%s731_s0 + $0x58] sm:$0xff]  ;;  %p517_p0 = scmp.ne.s32.totalorder %s352_s4, %s516_s11  ;;  %p521_p1 = scmp.lt.s32.totalorder %s352_s4, %s352_s4 }
   0xb   :  { %v480_v25 = vpack.c.bf16 %v41_v24, %v40_v23  ;;  %v486_v28 = vpack.c.bf16 %v43_v27, %v42_v26  ;;  %v44_v29 = vld [vmem:[%s731_s0 + $0x60] sm:$0xff]  ;;  %v45_v30 = vld [vmem:[%s731_s0 + $0x68] sm:$0xff]  ;;  %v46_v32 = vld [vmem:[%s731_s0 + $0x70] sm:$0xff]  ;;  %p522_p2 = scmp.lt.s32.totalorder %s520_s12, %s516_s11 }
   0xc   :  { %233 = vperm.xlu1 %515, %v225_v19   ;;  %v492_v31 = vpack.c.bf16 %v45_v30, %v44_v29  ;;  %v47_v33 = vld [vmem:[%s731_s0 + $0x78] sm:$0xff]  ;;  %v29_v35 = vld [vmem:[%s732_s1 + $0x8] sm:$0xff]  ;;  %v30_v36 = vld [vmem:[%s732_s1 + $0x10] sm:$0xff] }
   0xd   :  { %467 = vmatpush3.bf16.xpose.msk.msra.mxu0 %vm593_vm1, %v462_v7  ;;  %228 = vperm.xlu0 %514, %v224_v16   ;;  %v498_v34 = vpack.c.bf16 %v47_v33, %v46_v32  ;;  %v31_v37 = vld [vmem:[%s732_s1 + $0x18] sm:$0xff]  ;;  %v222_v38 = vld [vmem:[%s734_s3] sm:$0xff]  ;;  %v223_v57 = vld [vmem:[%s734_s3 + $0x8] sm:$0xff]  ;;  %p523_p3 = por %p522_p2, %p521_p1 }
   0xe   :  { %470 = vmatprep.subr.msk.bf16.mxu0 %vm593_vm1, %v468_v13  ;;  %453 = vmatprep.mubr.msk.f32.mxu1 %vm236_vm2, %v222_v38 }
   0xf   :  { %p524_p4 = pnand %p523_p3, %p517_p0 }
  0x10   :  { %329 = vperm.xlu1 %515, %v321_v22  }
  0x11   :  { %324 = vperm.xlu0 %514, %v320_v21  }
  0x15   :  { %473 = vmatpush3.bf16.xpose.msk.msra.mxu0 %vm593_vm1, %v468_v13 }
  0x16   :  { %476 = vmatprep.subr.msk.bf16.mxu0 %vm593_vm1, %v474_v20 }
  0x1d   :  { %479 = vmatpush3.bf16.xpose.msk.msra.mxu0 %vm593_vm1, %v474_v20 }
  0x1e   :  { %482 = vmatprep.subr.msk.bf16.mxu0 %vm593_vm1, %v480_v25 }
  0x25   :  { %485 = vmatpush3.bf16.xpose.msk.msra.mxu0 %vm593_vm1, %v480_v25 }
  0x26   :  { %488 = vmatprep.subr.msk.bf16.mxu0 %vm593_vm1, %v486_v28 }
  0x2d   :  { %491 = vmatpush3.bf16.xpose.msk.msra.mxu0 %vm593_vm1, %v486_v28 }
  0x2e   :  { %494 = vmatprep.subr.msk.bf16.mxu0 %vm593_vm1, %v492_v31 }
  0x35   :  { %497 = vmatpush3.bf16.xpose.msk.msra.mxu0 %vm593_vm1, %v492_v31 }
  0x36   :  { %500 = vmatprep.subr.msk.bf16.mxu0 %vm593_vm1, %v498_v34 }
  0x3d   :  { %503 = vmatpush3.bf16.xpose.msk.msra.mxu0 %vm593_vm1, %v498_v34 }
  0x44   :  { %440 = vmatmul.mubr.msk.f32.vlgmr.msra.gmra.mrb[0].mxu0 %vm72_vm0, %v29_v35 }
  0x45   :  { %442 = vmatprep.mubr.msk.f32.mxu0 %vm72_vm0, %v30_v36 }
  0x48   :  { %443 = vmatmul.mubr.msk.f32.gmra.mrb[2].mxu0 %vm72_vm0, %v31_v37 }
  0x83   :  { %v65_v40 = vpop.permute.xlu1 %64 }
  0x84   :  { %v55_v39 = vpop.permute.xlu0 %54 }
  0x87   :  { %v70_v47 = vpop.permute.xlu1 %69 }
  0x88   :  { %v60_v41 = vpop.permute.xlu0 %59 }
  0x8b   :  { %v234_v58 = vpop.permute.xlu1 %233 }
  0x8c   :  { %v229_v59 = vpop.permute.xlu0 %228 }
  0x8f   :  { %v330_v1 = vpop.permute.xlu1 %329 }
  0x90   :  { %v325_v3 = vpop.permute.xlu0 %324 }
 0x117   :  { %v441_v42 = vpop.f32.mrb[0].mxu0 }
 0x118   :  { %v205_v43 = vadd.f32 %v441_v42, %v60_v41  ;;  %v199_v44 = vpop.f32.mrb[1].mxu0 }
 0x119   :  { %v200_v45 = vadd.f32 %v199_v44, %v55_v39 }
 0x11a   :  { %v219_v46 = vmax.f32 %v205_v43, 0.0 }
 0x11b   :  { %v218_v48 = vmax.f32 %v200_v45, 0.0  ;;  %v444_v49 = vpop.f32.mrb[2].mxu0 }
 0x11c   :  { %v215_v50 = vadd.f32 %v444_v49, %v70_v47  ;;  %v209_v51 = vpop.f32.mrb[3].mxu0 }
 0x11d   :  { %v210_v52 = vadd.f32 %v209_v51, %v65_v40  ;;  %v504_v53 = vpack.c.bf16 %v219_v46, %v218_v48 }
 0x11e   :  { %v221_v54 = vmax.f32 %v215_v50, 0.0 }
 0x11f   :  { %v220_v55 = vmax.f32 %v210_v52, 0.0  ;;  %505 = vmatprep.subr.bf16.mxu1 %v504_v53 }
 0x120   :  { %507 = vmatpush3.bf16.msra.mxu1 %v504_v53 }
 0x121   :  { %v508_v56 = vpack.c.bf16 %v221_v54, %v220_v55 }
 0x123   :  { %509 = vmatprep.subr.bf16.mxu1 %v508_v56 }
 0x124   :  { %511 = vmatpush3.bf16.msra.mxu1 %v508_v56 }
 0x127   :  { %454 = vmatmul.mubr.msk.f32.vlgmr.msra.gmra.mrb[0].mxu1 %vm236_vm2, %v223_v57 }
 0x1fa   :  { %v455_v60 = vpop.f32.mrb[0].mxu1 }
 0x1fb   :  { %v315_v61 = vadd.f32 %v455_v60, %v234_v58  ;;  %v309_v62 = vpop.f32.mrb[1].mxu1 }
 0x1fc   :  { %v310_v63 = vadd.f32 %v309_v62, %v229_v59 }
 0x1fd   :  { %v319_v0 = vmax.f32 %v315_v61, 0.0 }
 0x1fe   :  { %v318_v2 = vmax.f32 %v310_v63, 0.0 }
 0x1ff   :  { %v333_v4 = vmul.f32 %v330_v1, %v319_v0 }
 0x200   :  { %v332_v5 = vmul.f32 %v325_v3, %v318_v2 }
 0x202   :  { %v334_v6 = vadd.f32 %v333_v4, %v332_v5 }
 0x204   :  { %v335_v7 = vrot.slane %v334_v6, 4 }
 0x206   :  { %v336_v8 = vadd.f32 %v335_v7, %v334_v6 }
 0x208   :  { %v337_v9 = vrot.slane %v336_v8, 2 }
 0x20a   :  { %v338_v10 = vadd.f32 %v337_v9, %v336_v8 }
 0x20c   :  { %v339_v11 = vrot.slane %v338_v10, 1 }
 0x20e   :  { %v340_v13 = vadd.f32 %v339_v11, %v338_v10 }
 0x210   :  { %v343_v14 = vadd.f32 %v342_v12, %v340_v13 }
 0x212   :  { %344 = vst [vmem:[#allocation3] sm:$0x1] %v343_v14 }
 0x213   :  { %527 = shalt.err (!%p524_p4)
}
 0x214   :  { %s528_s14 = scalar_lea.hbm %s738_s7, 16 }
 0x215   :  { %p529_p5 = scmp.ne.s32.totalorder %s738_s7, %s528_s14  ;;  %p532_p6 = scmp.lt.u32.totalorder %s528_s14, %s738_s7 }
 0x217   :  { %p534_p7 = pnand %p532_p6, %p529_p5 }
 0x219   :  { %537 = shalt.err (!%p534_p7)
}
 0x21a   :  { %354 = dma.vmem_to_hbm [thread:$0]  %s352_s4, 16, %s738_s7, [#allocation4]  }
 0x21b   :  { %538 = dma.done.wait [#allocation4], 16  }
 0x21c   :  { %539 = vsyncadd [#allocation4], 4294967280 }
 0x21d   :  { %358 = vsyncpa [#allocation4], 1 }

</bundles_post_ra>
